<compile_context>
chip_gen: v6e
topology: v6e:2x2x1
jax: 0.10.0
libtpu: 0.0.40
codegen_flags: <defaults>
</compile_context>

<pallas_src>
import functools

import jax
import jax.numpy as jnp
from jax.experimental import pallas as pl
from jax.experimental.pallas import tpu as pltpu

D_IN, H1, H2, D_OUT = 1792, 256, 128, 3
D_OUT_PAD = 128  # pad final output dim to a full 128-lane width


def mlp_kernel(x_ref, w1_ref, b1_ref, w2_ref, b2_ref, w3_ref, b3_ref, o_ref):
    # fc1 + ReLU  (bf16 MXU inputs, f32 accumulation, f32 bias/activation)
    h1 = jnp.dot(x_ref[...], w1_ref[...], preferred_element_type=jnp.float32)
    h1 = jnp.maximum(h1 + b1_ref[...], 0.0)
    # fc2 + ReLU
    h2 = jnp.dot(h1.astype(jnp.bfloat16), w2_ref[...],
                 preferred_element_type=jnp.float32)
    h2 = jnp.maximum(h2 + b2_ref[...], 0.0)
    # fc3 (no activation); output padded to 128 lanes for a lane-dense store
    o_ref[...] = jnp.dot(h2.astype(jnp.bfloat16), w3_ref[...],
                         preferred_element_type=jnp.float32) + b3_ref[...]


def _round_up(x, m):
    return (x + m - 1) // m * m


def pick_block_m(batch, max_block=512):
    """Large M tile for MXU occupancy; keep >= 2 grid steps when batch allows."""
    padded = _round_up(max(batch, 1), 16)   # bf16 sublane packing minimum
    bm = max_block
    while bm > 16 and bm * 2 > padded:
        bm //= 2
    return bm


def prepare_params(params):
    """One-time param prep: bf16 weights, fc3 padded to 128 cols, 2-D f32 biases."""
    w1, b1, w2, b2, w3, b3 = params
    w3_p = jnp.zeros((H2, D_OUT_PAD), jnp.float32).at[:, :D_OUT].set(w3)
    b3_p = jnp.zeros((1, D_OUT_PAD), jnp.float32).at[:, :D_OUT].set(
        b3.reshape(1, -1))
    return (
        w1.astype(jnp.bfloat16),
        b1.reshape(1, H1).astype(jnp.float32),
        w2.astype(jnp.bfloat16),
        b2.reshape(1, H2).astype(jnp.float32),
        w3_p.astype(jnp.bfloat16),
        b3_p,
    )


@functools.partial(jax.jit, static_argnames=("block_m",))
def custom_dnn_forward(x, prepared_params, *, block_m=None):
    """x: [B, 1792] float32 -> [B, 3] float32."""
    w1, b1, w2, b2, w3, b3 = prepared_params
    B = x.shape[0]
    if block_m is None:
        block_m = pick_block_m(B)

    # Ragged batch: zero-pad rows to a multiple of block_m, slice afterwards.
    B_pad = _round_up(B, block_m)
    x_bf16 = x.astype(jnp.bfloat16)
    if B_pad != B:
        x_bf16 = jnp.pad(x_bf16, ((0, B_pad - B), (0, 0)))

    grid = (B_pad // block_m,)
    out_padded = pl.pallas_call(
        mlp_kernel,
        out_shape=jax.ShapeDtypeStruct((B_pad, D_OUT_PAD), jnp.float32),
        grid_spec=pltpu.PrefetchScalarGridSpec(
            num_scalar_prefetch=0,
            grid=grid,
            in_specs=[
                pl.BlockSpec((block_m, D_IN), lambda i: (i, 0)),   # x tile (bf16)
                pl.BlockSpec((D_IN, H1), lambda i: (0, 0)),        # w1 (resident)
                pl.BlockSpec((1, H1), lambda i: (0, 0)),           # b1 (f32)
                pl.BlockSpec((H1, H2), lambda i: (0, 0)),          # w2
                pl.BlockSpec((1, H2), lambda i: (0, 0)),           # b2 (f32)
                pl.BlockSpec((H2, D_OUT_PAD), lambda i: (0, 0)),   # w3 (padded)
                pl.BlockSpec((1, D_OUT_PAD), lambda i: (0, 0)),    # b3 (padded)
            ],
            out_specs=pl.BlockSpec((block_m, D_OUT_PAD), lambda i: (i, 0)),
        ),
        compiler_params=pltpu.CompilerParams(
            dimension_semantics=("parallel",),
            vmem_limit_bytes=32 * 1024 * 1024,
        ),
    )(x_bf16, w1, b1, w2, b2, w3, b3)

    return out_padded[:B, :D_OUT]


def init_params(key):
    """Deterministic init matching nn.Linear's U(-1/sqrt(fan_in), 1/sqrt(fan_in))."""
    def linear(key, fan_in, fan_out):
        kw, kb = jax.random.split(key)
        bound = 1.0 / jnp.sqrt(fan_in)
        # stored as [in, out] so the kernel does x @ W
        w = jax.random.uniform(kw, (fan_in, fan_out), jnp.float32, -bound, bound)
        b = jax.random.uniform(kb, (fan_out,), jnp.float32, -bound, bound)
        return w, b

    k1, k2, k3 = jax.random.split(key, 3)
    w1, b1 = linear(k1, D_IN, H1)
    w2, b2 = linear(k2, H1, H2)
    w3, b3 = linear(k3, H2, D_OUT)
    return (w1, b1, w2, b2, w3, b3)


def reference_forward_f32(x, params):
    w1, b1, w2, b2, w3, b3 = params
    h = jnp.maximum(x @ w1 + b1, 0.0)
    h = jnp.maximum(h @ w2 + b2, 0.0)
    return h @ w3 + b3


def reference_forward_bf16(x, params):
    """Precision-matched reference: bf16 matmul inputs, f32 accumulation."""
    w1, b1, w2, b2, w3, b3 = params
    h = jnp.dot(x.astype(jnp.bfloat16), w1.astype(jnp.bfloat16),
                preferred_element_type=jnp.float32) + b1
    h = jnp.maximum(h, 0.0)
    h = jnp.dot(h.astype(jnp.bfloat16), w2.astype(jnp.bfloat16),
                preferred_element_type=jnp.float32) + b2
    h = jnp.maximum(h, 0.0)
    return jnp.dot(h.astype(jnp.bfloat16), w3.astype(jnp.bfloat16),
                   preferred_element_type=jnp.float32) + b3


if __name__ == "__main__":
    key = jax.random.PRNGKey(0)
    k_param, k_x = jax.random.split(key)

    params = init_params(k_param)
    prepared = prepare_params(params)

    B = 10  # deliberately not a multiple of the block size (ragged-batch path)
    x = jax.random.normal(k_x, (B, D_IN), jnp.float32)

    out = custom_dnn_forward(x, prepared)
    out = jax.block_until_ready(out)
    assert out.shape == (B, D_OUT), out.shape

    # Precision-matched (bf16-input) reference: should agree very closely.
    ref_bf16 = reference_forward_bf16(x, params)
    assert jnp.allclose(out, ref_bf16, atol=2e-2, rtol=2e-2), (
        float(jnp.max(jnp.abs(out - ref_bf16))))

    # Loose sanity check against the full-f32 reference.
    ref_f32 = reference_forward_f32(x, params)
    assert jnp.allclose(out, ref_f32, atol=1e-1, rtol=1e-1), (
        float(jnp.max(jnp.abs(out - ref_f32))))

    print("KERNEL_OK")
</pallas_src>

<mosaic_0001>
module attributes {stable_mosaic.version = 11 : i64} {
  func.func @mlp_kernel(%arg0: i32, %arg1: memref<16x1792xbf16, #tpu.memory_space<vmem>>, %arg2: memref<1792x256xbf16, #tpu.memory_space<vmem>>, %arg3: memref<1x256xf32, #tpu.memory_space<vmem>>, %arg4: memref<256x128xbf16, #tpu.memory_space<vmem>>, %arg5: memref<1x128xf32, #tpu.memory_space<vmem>>, %arg6: memref<128x128xbf16, #tpu.memory_space<vmem>>, %arg7: memref<1x128xf32, #tpu.memory_space<vmem>>, %arg8: memref<16x128xf32, #tpu.memory_space<vmem>>) attributes {dimension_semantics = [#tpu.dimension_semantics<parallel>], iteration_bounds = array<i64: 1>, scalar_prefetch = 0 : i64, scratch_operands = 0 : i64, tpu.core_type = #tpu.core_type<tc>, window_params = [{transform_indices = @transform_0, window_bounds = array<i64: 16, 1792>}, {pipeline_mode = #tpu.pipeline_mode<synchronous>, transform_indices = @transform_1, window_bounds = array<i64: 1792, 256>}, {pipeline_mode = #tpu.pipeline_mode<synchronous>, transform_indices = @transform_2, window_bounds = array<i64: 1, 256>}, {pipeline_mode = #tpu.pipeline_mode<synchronous>, transform_indices = @transform_3, window_bounds = array<i64: 256, 128>}, {pipeline_mode = #tpu.pipeline_mode<synchronous>, transform_indices = @transform_4, window_bounds = array<i64: 1, 128>}, {pipeline_mode = #tpu.pipeline_mode<synchronous>, transform_indices = @transform_5, window_bounds = array<i64: 128, 128>}, {pipeline_mode = #tpu.pipeline_mode<synchronous>, transform_indices = @transform_6, window_bounds = array<i64: 1, 128>}, {transform_indices = @transform_7, window_bounds = array<i64: 16, 128>}]} {
    %c0 = arith.constant 0 : index
    %c0_0 = arith.constant 0 : index
    %0 = vector.load %arg1[%c0, %c0_0] : memref<16x1792xbf16, #tpu.memory_space<vmem>>, vector<16x1792xbf16>
    %c0_1 = arith.constant 0 : index
    %c0_2 = arith.constant 0 : index
    %1 = vector.load %arg2[%c0_1, %c0_2] : memref<1792x256xbf16, #tpu.memory_space<vmem>>, vector<1792x256xbf16>
    %cst = arith.constant dense<0.000000e+00> : vector<16x256xf32>
    %2 = tpu.matmul %0, %1, %cst {dimension_numbers = #tpu.dot_dimension_numbers<[1], [0], [0], [1], [0, 0, 1, 1], [], []>} : vector<16x1792xbf16>, vector<1792x256xbf16>, vector<16x256xf32> -> vector<16x256xf32>
    %c0_3 = arith.constant 0 : index
    %c0_4 = arith.constant 0 : index
    %3 = vector.load %arg3[%c0_3, %c0_4] : memref<1x256xf32, #tpu.memory_space<vmem>>, vector<1x256xf32>
    %4 = vector.broadcast %3 : vector<1x256xf32> to vector<16x256xf32>
    %5 = arith.addf %2, %4 : vector<16x256xf32>
    %cst_5 = arith.constant 0.000000e+00 : f32
    %6 = vector.broadcast %cst_5 : f32 to vector<16x256xf32>
    %7 = arith.maximumf %5, %6 : vector<16x256xf32>
    %8 = arith.truncf %7 : vector<16x256xf32> to vector<16x256xbf16>
    %c0_6 = arith.constant 0 : index
    %c0_7 = arith.constant 0 : index
    %9 = vector.load %arg4[%c0_6, %c0_7] : memref<256x128xbf16, #tpu.memory_space<vmem>>, vector<256x128xbf16>
    %cst_8 = arith.constant dense<0.000000e+00> : vector<16x128xf32>
    %10 = tpu.matmul %8, %9, %cst_8 {dimension_numbers = #tpu.dot_dimension_numbers<[1], [0], [0], [1], [0, 0, 1, 1], [], []>} : vector<16x256xbf16>, vector<256x128xbf16>, vector<16x128xf32> -> vector<16x128xf32>
    %c0_9 = arith.constant 0 : index
    %c0_10 = arith.constant 0 : index
    %11 = vector.load %arg5[%c0_9, %c0_10] : memref<1x128xf32, #tpu.memory_space<vmem>>, vector<1x128xf32>
    %12 = vector.broadcast %11 : vector<1x128xf32> to vector<16x128xf32>
    %13 = arith.addf %10, %12 : vector<16x128xf32>
    %cst_11 = arith.constant 0.000000e+00 : f32
    %14 = vector.broadcast %cst_11 : f32 to vector<16x128xf32>
    %15 = arith.maximumf %13, %14 : vector<16x128xf32>
    %16 = arith.truncf %15 : vector<16x128xf32> to vector<16x128xbf16>
    %c0_12 = arith.constant 0 : index
    %c0_13 = arith.constant 0 : index
    %17 = vector.load %arg6[%c0_12, %c0_13] : memref<128x128xbf16, #tpu.memory_space<vmem>>, vector<128x128xbf16>
    %cst_14 = arith.constant dense<0.000000e+00> : vector<16x128xf32>
    %18 = tpu.matmul %16, %17, %cst_14 {dimension_numbers = #tpu.dot_dimension_numbers<[1], [0], [0], [1], [0, 0, 1, 1], [], []>} : vector<16x128xbf16>, vector<128x128xbf16>, vector<16x128xf32> -> vector<16x128xf32>
    %c0_15 = arith.constant 0 : index
    %c0_16 = arith.constant 0 : index
    %19 = vector.load %arg7[%c0_15, %c0_16] : memref<1x128xf32, #tpu.memory_space<vmem>>, vector<1x128xf32>
    %20 = vector.broadcast %19 : vector<1x128xf32> to vector<16x128xf32>
    %21 = arith.addf %18, %20 : vector<16x128xf32>
    %c0_17 = arith.constant 0 : index
    %c0_18 = arith.constant 0 : index
    %22 = vector.load %arg8[%c0_17, %c0_18] : memref<16x128xf32, #tpu.memory_space<vmem>>, vector<16x128xf32>
    tpu.vector_store %arg8[%c0_17, %c0_18], %21 {strides = array<i32>} : memref<16x128xf32, #tpu.memory_space<vmem>>, vector<16x128xf32>,
    return
  }
  func.func @transform_0(%arg0: i32) -> (i32, i32) {
    %c0_i32 = arith.constant 0 : i32
    %c0_i32_0 = arith.constant 0 : i32
    return %arg0, %c0_i32 : i32, i32
  }
  func.func @transform_1(%arg0: i32) -> (i32, i32) {
    %c0_i32 = arith.constant 0 : i32
    %c0_i32_0 = arith.constant 0 : i32
    %c0_i32_1 = arith.constant 0 : i32
    return %c0_i32, %c0_i32_0 : i32, i32
  }
  func.func @transform_2(%arg0: i32) -> (i32, i32) {
    %c0_i32 = arith.constant 0 : i32
    %c0_i32_0 = arith.constant 0 : i32
    %c0_i32_1 = arith.constant 0 : i32
    return %c0_i32, %c0_i32_0 : i32, i32
  }
  func.func @transform_3(%arg0: i32) -> (i32, i32) {
    %c0_i32 = arith.constant 0 : i32
    %c0_i32_0 = arith.constant 0 : i32
    %c0_i32_1 = arith.constant 0 : i32
    return %c0_i32, %c0_i32_0 : i32, i32
  }
  func.func @transform_4(%arg0: i32) -> (i32, i32) {
    %c0_i32 = arith.constant 0 : i32
    %c0_i32_0 = arith.constant 0 : i32
    %c0_i32_1 = arith.constant 0 : i32
    return %c0_i32, %c0_i32_0 : i32, i32
  }
  func.func @transform_5(%arg0: i32) -> (i32, i32) {
    %c0_i32 = arith.constant 0 : i32
    %c0_i32_0 = arith.constant 0 : i32
    %c0_i32_1 = arith.constant 0 : i32
    return %c0_i32, %c0_i32_0 : i32, i32
  }
  func.func @transform_6(%arg0: i32) -> (i32, i32) {
    %c0_i32 = arith.constant 0 : i32
    %c0_i32_0 = arith.constant 0 : i32
    %c0_i32_1 = arith.constant 0 : i32
    return %c0_i32, %c0_i32_0 : i32, i32
  }
  func.func @transform_7(%arg0: i32) -> (i32, i32) {
    %c0_i32 = arith.constant 0 : i32
    %c0_i32_0 = arith.constant 0 : i32
    return %arg0, %c0_i32 : i32, i32
  }
}

</mosaic_0001>

<bundles_post_ra>
// kernel: custom_dnn_forward.1
= control target key start
LH: loop header
LB: loop body
LE: loop exit
PB: predicated region body
PF: predicated region fallthrough
CT: control target
= control target key end

     0   :  { %12 = vsyncpa [#allocation3], 0  ;;  %s2809_s24 = smov [#allocation2]   ;;  %s2995_s0 = inlined_call_operand.vmem [shape: bf16[16,1792], index: 0, kind: input, shape index: {}]   ;;  %s2996_s1 = inlined_call_operand.hbm [shape: bf16[1792,256], index: 1, kind: input, shape index: {}]   ;;  %s2997_s2 = inlined_call_operand.vmem [shape: f32[1,256], index: 2, kind: input, shape index: {}]   ;;  %s2998_s3 = inlined_call_operand.vmem [shape: bf16[256,128], index: 3, kind: input, shape index: {}]   ;;  %s2999_s4 = inlined_call_operand.vmem [shape: f32[1,128], index: 4, kind: input, shape index: {}]   ;;  %s3000_s5 = inlined_call_operand.vmem [shape: bf16[128,128], index: 5, kind: input, shape index: {}]   ;;  %s3001_s6 = inlined_call_operand.vmem [shape: f32[1,128], index: 6, kind: input, shape index: {}]   ;;  %s3002_s7 = inlined_call_operand.vmem [shape: f32[16,128], index: 7, kind: output, shape index: {}]  }
   0x1   :  { %s20_s25 = sshll.u32 %s2809_s24, 4  ;;  %s21_s25 = int_to_ptr.vmem [resolvable:$true] %s20_s25 }
   0x2   :  { %s2795_s26 = scalar_lea.vmem %s21_s25, 28672  ;;  %p2800_p1 = scmp.lt.s32.totalorder %s21_s25, %s21_s25 }
   0x3   :  { %p2796_p0 = scmp.ne.s32.totalorder %s21_s25, %s2795_s26  ;;  %p2801_p2 = scmp.lt.s32.totalorder %s2795_s26, %s2795_s26 }
   0x5   :  { %p2802_p3 = por %p2801_p2, %p2800_p1 }
   0x7   :  { %p2803_p4 = pnand %p2802_p3, %p2796_p0 }
   0x9   :  { %2806 = shalt.err (!%p2803_p4)
}
   0xa   :  { %s2810_s27 = smov 128   ;;  %s2811_s28 = smov 8  }
   0xb   :  { %26 = dma.hbm_to_vmem [thread:$0]  %s2996_s1, 28672, %s21_s25, [#allocation3], %s2810_s27, %s2810_s27, %s2811_s28  }
   0xc   :  { %2807 = dma.done.wait [#allocation3], 28672  }
   0xd   :  { %2808 = vsyncadd [#allocation3], 4294938624  ;;  %v2406_v0 = vld [vmem:[#allocation2 + $0x74] ss:$8 sps:$4 sm:$0xff]   ;;  %v2408_v1 = vld [vmem:[#allocation2 + $0x70] ss:$8 sps:$4 sm:$0xff]  }
   0xe   :  { %1481 = vmatprep.subr.bf16.mxu0 %v2406_v0  ;;  %v2409_v2 = vld [vmem:[#allocation2 + $0x174] ss:$8 sps:$4 sm:$0xff]   ;;  %v2411_v3 = vld [vmem:[#allocation2 + $0x170] ss:$8 sps:$4 sm:$0xff]   ;;  %v2412_v4 = vld [vmem:[#allocation2 + $0x64] ss:$8 sps:$4 sm:$0xff]  }
   0xf   :  { %1482 = vmatpush1.bf16.msra.mxu0 %v2408_v1  ;;  %v2414_v5 = vld [vmem:[#allocation2 + $0x60] ss:$8 sps:$4 sm:$0xff]   ;;  %1524 = vmatprep.subr.bf16.mxu1 %v2409_v2  ;;  %v2415_v6 = vld [vmem:[#allocation2 + $0x164] ss:$8 sps:$4 sm:$0xff]   ;;  %v2418_v8 = vld [vmem:[#allocation2 + $0x54] ss:$8 sps:$4 sm:$0xff]  }
  0x10   :  { %1525 = vmatpush1.bf16.msra.mxu1 %v2411_v3  ;;  %1483 = vmatprep.subr.bf16.mxu0 %v2412_v4  ;;  %v2417_v7 = vld [vmem:[#allocation2 + $0x160] ss:$8 sps:$4 sm:$0xff]   ;;  %v2420_v9 = vld [vmem:[#allocation2 + $0x50] ss:$8 sps:$4 sm:$0xff]   ;;  %v2421_v10 = vld [vmem:[#allocation2 + $0x154] ss:$8 sps:$4 sm:$0xff]  }
  0x11   :  { %1526 = vmatprep.subr.bf16.mxu1 %v2415_v6  ;;  %v2424_v11 = vld [vmem:[#allocation2 + $0x44] ss:$8 sps:$4 sm:$0xff]   ;;  %v2423_v12 = vld [vmem:[#allocation2 + $0x150] ss:$8 sps:$4 sm:$0xff]   ;;  %v2426_v14 = vld [vmem:[#allocation2 + $0x40] ss:$8 sps:$4 sm:$0xff]  }
  0x12   :  { %v2427_v13 = vld [vmem:[#allocation2 + $0x144] ss:$8 sps:$4 sm:$0xff]   ;;  %v2430_v15 = vld [vmem:[#allocation2 + $0x34] ss:$8 sps:$4 sm:$0xff]   ;;  %v2429_v16 = vld [vmem:[#allocation2 + $0x140] ss:$8 sps:$4 sm:$0xff]  }
  0x13   :  { %1484 = vmatpush1.bf16.msra.mxu0 %v2414_v5  ;;  %v2433_v17 = vld [vmem:[#allocation2 + $0x134] ss:$8 sps:$4 sm:$0xff]   ;;  %v2432_v18 = vld [vmem:[#allocation2 + $0x30] ss:$8 sps:$4 sm:$0xff]   ;;  %v2436_v19 = vld [vmem:[#allocation2 + $0x24] ss:$8 sps:$4 sm:$0xff]  }
  0x14   :  { %1485 = vmatprep.subr.bf16.mxu0 %v2418_v8  ;;  %1527 = vmatpush1.bf16.msra.mxu1 %v2417_v7  ;;  %v2435_v20 = vld [vmem:[#allocation2 + $0x130] ss:$8 sps:$4 sm:$0xff]   ;;  %v2439_v21 = vld [vmem:[#allocation2 + $0x124] ss:$8 sps:$4 sm:$0xff]   ;;  %v2438_v22 = vld [vmem:[#allocation2 + $0x20] ss:$8 sps:$4 sm:$0xff]  }
  0x15   :  { %1528 = vmatprep.subr.bf16.mxu1 %v2421_v10  ;;  %v2442_v23 = vld [vmem:[#allocation2 + $0x14] ss:$8 sps:$4 sm:$0xff]   ;;  %v2441_v24 = vld [vmem:[#allocation2 + $0x120] ss:$8 sps:$4 sm:$0xff]   ;;  %v2444_v26 = vld [vmem:[#allocation2 + $0x10] ss:$8 sps:$4 sm:$0xff]  }
  0x16   :  { %v2445_v25 = vld [vmem:[#allocation2 + $0x114] ss:$8 sps:$4 sm:$0xff]   ;;  %v2448_v27 = vld [vmem:[#allocation2 + $0x4] ss:$8 sps:$4 sm:$0xff]   ;;  %v2447_v28 = vld [vmem:[#allocation2 + $0x110] ss:$8 sps:$4 sm:$0xff]  }
  0x17   :  { %1486 = vmatpush1.bf16.msra.mxu0 %v2420_v9  ;;  %v2451_v29 = vld [vmem:[#allocation2 + $0x104] ss:$8 sps:$4 sm:$0xff]   ;;  %v2450_v30 = vld [vmem:[#allocation2] ss:$8 sps:$4 sm:$0xff]   ;;  %v2454_v31 = vld [vmem:[#allocation2 + $0xf4] ss:$8 sps:$4 sm:$0xff]  }
  0x18   :  { %1487 = vmatprep.subr.bf16.mxu0 %v2424_v11  ;;  %1529 = vmatpush1.bf16.msra.mxu1 %v2423_v12  ;;  %v2453_v32 = vld [vmem:[#allocation2 + $0x100] ss:$8 sps:$4 sm:$0xff]   ;;  %v2457_v33 = vld [vmem:[#allocation2 + $0x1f4] ss:$8 sps:$4 sm:$0xff]   ;;  %v2456_v34 = vld [vmem:[#allocation2 + $0xf0] ss:$8 sps:$4 sm:$0xff]  }
  0x19   :  { %1530 = vmatprep.subr.bf16.mxu1 %v2427_v13  ;;  %v2460_v35 = vld [vmem:[#allocation2 + $0xe4] ss:$8 sps:$4 sm:$0xff]   ;;  %v2459_v36 = vld [vmem:[#allocation2 + $0x1f0] ss:$8 sps:$4 sm:$0xff]   ;;  %v2462_v38 = vld [vmem:[#allocation2 + $0xe0] ss:$8 sps:$4 sm:$0xff]  }
  0x1a   :  { %v2463_v37 = vld [vmem:[#allocation2 + $0x1e4] ss:$8 sps:$4 sm:$0xff]   ;;  %v2466_v39 = vld [vmem:[#allocation2 + $0xd4] ss:$8 sps:$4 sm:$0xff]   ;;  %v2465_v40 = vld [vmem:[#allocation2 + $0x1e0] ss:$8 sps:$4 sm:$0xff]  }
  0x1b   :  { %1488 = vmatpush1.bf16.msra.mxu0 %v2426_v14  ;;  %v2469_v41 = vld [vmem:[#allocation2 + $0x1d4] ss:$8 sps:$4 sm:$0xff]   ;;  %v2468_v42 = vld [vmem:[#allocation2 + $0xd0] ss:$8 sps:$4 sm:$0xff]   ;;  %v2472_v43 = vld [vmem:[#allocation2 + $0xc4] ss:$8 sps:$4 sm:$0xff]  }
  0x1c   :  { %1489 = vmatprep.subr.bf16.mxu0 %v2430_v15  ;;  %1531 = vmatpush1.bf16.msra.mxu1 %v2429_v16  ;;  %v2471_v44 = vld [vmem:[#allocation2 + $0x1d0] ss:$8 sps:$4 sm:$0xff]   ;;  %v2475_v45 = vld [vmem:[#allocation2 + $0x1c4] ss:$8 sps:$4 sm:$0xff]   ;;  %v2474_v46 = vld [vmem:[#allocation2 + $0xc0] ss:$8 sps:$4 sm:$0xff]  }
  0x1d   :  { %1532 = vmatprep.subr.bf16.mxu1 %v2433_v17  ;;  %v2503_v47 = vld [vmem:[%s2995_s0 + $0x4] ss:$56 sps:$4 sm:$0xff]   ;;  %v2477_v49 = vld [vmem:[#allocation2 + $0x1c0] ss:$8 sps:$4 sm:$0xff]   ;;  %v2480_v52 = vld [vmem:[#allocation2 + $0xb0] ss:$8 sps:$4 sm:$0xff]  }
  0x1e   :  { %v2478_v48 = vld [vmem:[#allocation2 + $0xb4] ss:$8 sps:$4 sm:$0xff]   ;;  %1513 = vmatprep.mubr.bf16.mxu0 %v2503_v47  ;;  %v2510_v51 = vld [vmem:[%s2995_s0 + $0xc] ss:$56 sps:$4 sm:$0xff]   ;;  %v2483_v54 = vld [vmem:[#allocation2 + $0x1b0] ss:$8 sps:$4 sm:$0xff]  }
  0x1f   :  { %1490 = vmatpush1.bf16.msra.mxu0 %v2432_v18  ;;  %v2481_v50 = vld [vmem:[#allocation2 + $0x1b4] ss:$8 sps:$4 sm:$0xff]   ;;  %v2484_v53 = vld [vmem:[#allocation2 + $0xa4] ss:$8 sps:$4 sm:$0xff]   ;;  %1556 = vmatprep.mubr.bf16.mxu1 %v2510_v51  ;;  %v2486_v56 = vld [vmem:[#allocation2 + $0xa0] ss:$8 sps:$4 sm:$0xff]  }
  0x20   :  { %1491 = vmatprep.subr.bf16.mxu0 %v2436_v19  ;;  %1533 = vmatpush1.bf16.msra.mxu1 %v2435_v20  ;;  %v2487_v55 = vld [vmem:[#allocation2 + $0x1a4] ss:$8 sps:$4 sm:$0xff]   ;;  %v2490_v57 = vld [vmem:[#allocation2 + $0x94] ss:$8 sps:$4 sm:$0xff]   ;;  %v2489_v58 = vld [vmem:[#allocation2 + $0x1a0] ss:$8 sps:$4 sm:$0xff]  }
  0x21   :  { %1534 = vmatprep.subr.bf16.mxu1 %v2439_v21  ;;  %v2493_v59 = vld [vmem:[#allocation2 + $0x194] ss:$8 sps:$4 sm:$0xff]   ;;  %v2492_v60 = vld [vmem:[#allocation2 + $0x90] ss:$8 sps:$4 sm:$0xff]   ;;  %v2496_v61 = vld [vmem:[#allocation2 + $0x84] ss:$8 sps:$4 sm:$0xff]  }
  0x22   :  { %v2495_v62 = vld [vmem:[#allocation2 + $0x190] ss:$8 sps:$4 sm:$0xff]   ;;  %v2499_v63 = vld [vmem:[#allocation2 + $0x184] ss:$8 sps:$4 sm:$0xff]   ;;  %v2498_v0 = vld [vmem:[#allocation2 + $0x80] ss:$8 sps:$4 sm:$0xff]  }
  0x23   :  { %1492 = vmatpush1.bf16.msra.mxu0 %v2438_v22  ;;  %v2507_v1 = vld [vmem:[#allocation2 + $0x274] ss:$8 sps:$4 sm:$0xff]   ;;  %v2504_v2 = vld [vmem:[#allocation2 + $0x180] ss:$8 sps:$4 sm:$0xff]   ;;  %v2505_v5 = vld [vmem:[#allocation2 + $0x270] ss:$8 sps:$4 sm:$0xff]  }
  0x24   :  { %1493 = vmatprep.subr.bf16.mxu0 %v2442_v23  ;;  %1535 = vmatpush1.bf16.msra.mxu1 %v2441_v24  ;;  %v2501_v3 = vld [vmem:[%s2995_s0] ss:$56 sps:$4 sm:$0xff]   ;;  %v2513_v4 = vld [vmem:[#allocation2 + $0x374] ss:$8 sps:$4 sm:$0xff]   ;;  %v2516_v7 = vld [vmem:[#allocation2 + $0x264] ss:$8 sps:$4 sm:$0xff]  }
  0x25   :  { %1536 = vmatprep.subr.bf16.mxu1 %v2445_v25  ;;  %v2508_v6 = vld [vmem:[%s2995_s0 + $0x8] ss:$56 sps:$4 sm:$0xff]   ;;  %v2511_v8 = vld [vmem:[#allocation2 + $0x370] ss:$8 sps:$4 sm:$0xff]   ;;  %v2519_v9 = vld [vmem:[#allocation2 + $0x364] ss:$8 sps:$4 sm:$0xff]  }
  0x26   :  { %v2514_v10 = vld [vmem:[#allocation2 + $0x260] ss:$8 sps:$4 sm:$0xff]   ;;  %v2522_v11 = vld [vmem:[#allocation2 + $0x254] ss:$8 sps:$4 sm:$0xff]   ;;  %v2520_v14 = vld [vmem:[#allocation2 + $0x250] ss:$8 sps:$4 sm:$0xff]  }
  0x27   :  { %1494 = vmatpush1.bf16.msra.mxu0 %v2444_v26  ;;  %v2517_v12 = vld [vmem:[#allocation2 + $0x360] ss:$8 sps:$4 sm:$0xff]   ;;  %v2525_v13 = vld [vmem:[#allocation2 + $0x354] ss:$8 sps:$4 sm:$0xff]   ;;  %v2528_v15 = vld [vmem:[#allocation2 + $0x244] ss:$8 sps:$4 sm:$0xff]  }
  0x28   :  { %1495 = vmatprep.subr.bf16.mxu0 %v2448_v27  ;;  %1537 = vmatpush1.bf16.msra.mxu1 %v2447_v28  ;;  %v2523_v16 = vld [vmem:[#allocation2 + $0x350] ss:$8 sps:$4 sm:$0xff]   ;;  %v2531_v17 = vld [vmem:[#allocation2 + $0x344] ss:$8 sps:$4 sm:$0xff]   ;;  %v2526_v18 = vld [vmem:[#allocation2 + $0x240] ss:$8 sps:$4 sm:$0xff]  }
  0x29   :  { %1538 = vmatprep.subr.bf16.mxu1 %v2451_v29  ;;  %v2534_v19 = vld [vmem:[#allocation2 + $0x234] ss:$8 sps:$4 sm:$0xff]   ;;  %v2529_v20 = vld [vmem:[#allocation2 + $0x340] ss:$8 sps:$4 sm:$0xff]   ;;  %v2532_v22 = vld [vmem:[#allocation2 + $0x230] ss:$8 sps:$4 sm:$0xff]  }
  0x2a   :  { %v2537_v21 = vld [vmem:[#allocation2 + $0x334] ss:$8 sps:$4 sm:$0xff]   ;;  %v2540_v23 = vld [vmem:[#allocation2 + $0x224] ss:$8 sps:$4 sm:$0xff]   ;;  %v2535_v24 = vld [vmem:[#allocation2 + $0x330] ss:$8 sps:$4 sm:$0xff]  }
  0x2b   :  { %1496 = vmatpush1.bf16.msra.mxu0 %v2450_v30  ;;  %v2543_v25 = vld [vmem:[#allocation2 + $0x324] ss:$8 sps:$4 sm:$0xff]   ;;  %v2538_v26 = vld [vmem:[#allocation2 + $0x220] ss:$8 sps:$4 sm:$0xff]   ;;  %v2546_v27 = vld [vmem:[#allocation2 + $0x214] ss:$8 sps:$4 sm:$0xff]  }
  0x2c   :  { %1497 = vmatprep.subr.bf16.mxu0 %v2454_v31  ;;  %1539 = vmatpush1.bf16.msra.mxu1 %v2453_v32  ;;  %v2541_v28 = vld [vmem:[#allocation2 + $0x320] ss:$8 sps:$4 sm:$0xff]   ;;  %v2549_v29 = vld [vmem:[#allocation2 + $0x314] ss:$8 sps:$4 sm:$0xff]   ;;  %v2544_v30 = vld [vmem:[#allocation2 + $0x210] ss:$8 sps:$4 sm:$0xff]  }
  0x2d   :  { %1540 = vmatprep.subr.bf16.mxu1 %v2457_v33  ;;  %v2547_v31 = vld [vmem:[#allocation2 + $0x310] ss:$8 sps:$4 sm:$0xff]   ;;  %v2552_v32 = vld [vmem:[#allocation2 + $0x204] ss:$8 sps:$4 sm:$0xff]   ;;  %v2573_v47 = vld [vmem:[#allocation2 + $0x3d4] ss:$8 sps:$4 sm:$0xff]  }
  0x2e   :  { %v2606_v33 = vld [vmem:[%s2995_s0 + $0x14] ss:$56 sps:$4 sm:$0xff]   ;;  %vm2813_vm0 = vmmov 0  }
  0x2f   :  { %1498 = vmatpush2.bf16.msra.mxu0 %v2456_v34  ;;  %v2555_v34 = vld [vmem:[#allocation2 + $0x304] ss:$8 sps:$4 sm:$0xff]  }
  0x30   :  { %1499 = vmatprep.subr.bf16.mxu0 %v2460_v35  ;;  %1541 = vmatpush2.bf16.msra.mxu1 %v2459_v36  ;;  %v2550_v35 = vld [vmem:[#allocation2 + $0x200] ss:$8 sps:$4 sm:$0xff]   ;;  %v2612_v36 = vld [vmem:[%s2995_s0 + $0x1c] ss:$56 sps:$4 sm:$0xff]   ;;  %v2579_v51 = vld [vmem:[#allocation2 + $0x3c4] ss:$8 sps:$4 sm:$0xff]  }
  0x31   :  { %1542 = vmatprep.subr.bf16.mxu1 %v2463_v37  ;;  %v2558_v37 = vld [vmem:[#allocation2 + $0x2f4] ss:$8 sps:$4 sm:$0xff]  }
  0x33   :  { %1500 = vmatpush2.bf16.msra.mxu0 %v2462_v38  ;;  %v2553_v38 = vld [vmem:[#allocation2 + $0x300] ss:$8 sps:$4 sm:$0xff]  }
  0x34   :  { %1501 = vmatprep.subr.bf16.mxu0 %v2466_v39  ;;  %1543 = vmatpush2.bf16.msra.mxu1 %v2465_v40  ;;  %v2561_v39 = vld [vmem:[#allocation2 + $0x3f4] ss:$8 sps:$4 sm:$0xff]   ;;  %v2556_v40 = vld [vmem:[#allocation2 + $0x2f0] ss:$8 sps:$4 sm:$0xff]  }
  0x35   :  { %1544 = vmatprep.subr.bf16.mxu1 %v2469_v41  ;;  %v2564_v41 = vld [vmem:[#allocation2 + $0x2e4] ss:$8 sps:$4 sm:$0xff]  }
  0x37   :  { %1502 = vmatpush2.bf16.msra.mxu0 %v2468_v42  ;;  %v2559_v42 = vld [vmem:[#allocation2 + $0x3f0] ss:$8 sps:$4 sm:$0xff]  }
  0x38   :  { %1503 = vmatprep.subr.bf16.mxu0 %v2472_v43  ;;  %1545 = vmatpush2.bf16.msra.mxu1 %v2471_v44  ;;  %v2567_v43 = vld [vmem:[#allocation2 + $0x3e4] ss:$8 sps:$4 sm:$0xff]   ;;  %v2562_v44 = vld [vmem:[#allocation2 + $0x2e0] ss:$8 sps:$4 sm:$0xff]  }
  0x39   :  { %1546 = vmatprep.subr.bf16.mxu1 %v2475_v45  ;;  %v2570_v45 = vld [vmem:[#allocation2 + $0x2d4] ss:$8 sps:$4 sm:$0xff]  }
  0x3b   :  { %1504 = vmatpush2.bf16.msra.mxu0 %v2474_v46  ;;  %v2565_v46 = vld [vmem:[#allocation2 + $0x3e0] ss:$8 sps:$4 sm:$0xff]  }
  0x3c   :  { %1505 = vmatprep.subr.bf16.mxu0 %v2478_v48  ;;  %1547 = vmatpush2.bf16.msra.mxu1 %v2477_v49  ;;  %v2568_v48 = vld [vmem:[#allocation2 + $0x2d0] ss:$8 sps:$4 sm:$0xff]   ;;  %v2576_v49 = vld [vmem:[#allocation2 + $0x2c4] ss:$8 sps:$4 sm:$0xff]  }
  0x3d   :  { %1548 = vmatprep.subr.bf16.mxu1 %v2481_v50  ;;  %v2571_v50 = vld [vmem:[#allocation2 + $0x3d0] ss:$8 sps:$4 sm:$0xff]  }
  0x3f   :  { %1506 = vmatpush2.bf16.msra.mxu0 %v2480_v52  ;;  %v2574_v52 = vld [vmem:[#allocation2 + $0x2c0] ss:$8 sps:$4 sm:$0xff]  }
  0x40   :  { %1507 = vmatprep.subr.bf16.mxu0 %v2484_v53  ;;  %1549 = vmatpush2.bf16.msra.mxu1 %v2483_v54  ;;  %v2582_v53 = vld [vmem:[#allocation2 + $0x2b4] ss:$8 sps:$4 sm:$0xff]   ;;  %v2577_v54 = vld [vmem:[#allocation2 + $0x3c0] ss:$8 sps:$4 sm:$0xff]  }
  0x41   :  { %1550 = vmatprep.subr.bf16.mxu1 %v2487_v55  ;;  %v2585_v55 = vld [vmem:[#allocation2 + $0x3b4] ss:$8 sps:$4 sm:$0xff]  }
  0x43   :  { %1508 = vmatpush2.bf16.msra.mxu0 %v2486_v56  ;;  %v2580_v56 = vld [vmem:[#allocation2 + $0x2b0] ss:$8 sps:$4 sm:$0xff]  }
  0x44   :  { %1509 = vmatprep.subr.bf16.mxu0 %v2490_v57  ;;  %1551 = vmatpush2.bf16.msra.mxu1 %v2489_v58  ;;  %v2588_v57 = vld [vmem:[#allocation2 + $0x2a4] ss:$8 sps:$4 sm:$0xff]   ;;  %v2583_v58 = vld [vmem:[#allocation2 + $0x3b0] ss:$8 sps:$4 sm:$0xff]  }
  0x45   :  { %1552 = vmatprep.subr.bf16.mxu1 %v2493_v59  ;;  %v2591_v59 = vld [vmem:[#allocation2 + $0x3a4] ss:$8 sps:$4 sm:$0xff]  }
  0x47   :  { %1510 = vmatpush2.bf16.msra.mxu0 %v2492_v60  ;;  %v2586_v60 = vld [vmem:[#allocation2 + $0x2a0] ss:$8 sps:$4 sm:$0xff]  }
  0x48   :  { %1511 = vmatprep.subr.bf16.mxu0 %v2496_v61  ;;  %1553 = vmatpush2.bf16.msra.mxu1 %v2495_v62  ;;  %v2594_v61 = vld [vmem:[#allocation2 + $0x294] ss:$8 sps:$4 sm:$0xff]   ;;  %v2589_v62 = vld [vmem:[#allocation2 + $0x3a0] ss:$8 sps:$4 sm:$0xff]  }
  0x49   :  { %1554 = vmatprep.subr.bf16.mxu1 %v2499_v63  ;;  %v2597_v63 = vld [vmem:[#allocation2 + $0x394] ss:$8 sps:$4 sm:$0xff]  }
  0x4b   :  { %1512 = vmatpush2.bf16.msra.mxu0 %v2498_v0  ;;  %v2592_v0 = vld [vmem:[#allocation2 + $0x290] ss:$8 sps:$4 sm:$0xff]  }
  0x4c   :  { %1567 = vmatprep.subr.bf16.mxu0 %v2507_v1  ;;  %1555 = vmatpush2.bf16.msra.mxu1 %v2504_v2  ;;  %v2600_v1 = vld [vmem:[#allocation2 + $0x284] ss:$8 sps:$4 sm:$0xff]   ;;  %v2595_v2 = vld [vmem:[#allocation2 + $0x390] ss:$8 sps:$4 sm:$0xff]  }
  0x4d   :  { %1610 = vmatprep.subr.bf16.mxu1 %v2513_v4  ;;  %v2598_v4 = vld [vmem:[#allocation2 + $0x280] ss:$8 sps:$4 sm:$0xff]  }
  0x4e   :  { %1514 = vmatmul.mubr.bf16.vlgmr.msra.gmra.mxu0 %v2501_v3  ;;  %v2603_v3 = vld [vmem:[#allocation2 + $0x384] ss:$8 sps:$4 sm:$0xff]  }
  0x4f   :  { %1568 = vmatpush1.bf16.msra.mxu0 %v2505_v5  ;;  %1557 = vmatmul.mubr.bf16.vlgmr.msra.gmra.mxu1 %v2508_v6  ;;  %v2609_v5 = vld [vmem:[#allocation2 + $0x474] ss:$8 sps:$4 sm:$0xff]   ;;  %v2601_v6 = vld [vmem:[#allocation2 + $0x380] ss:$8 sps:$4 sm:$0xff]  }
  0x50   :  { %1569 = vmatprep.subr.bf16.mxu0 %v2516_v7  ;;  %1611 = vmatpush1.bf16.msra.mxu1 %v2511_v8  ;;  %v2604_v7 = vld [vmem:[%s2995_s0 + $0x10] ss:$56 sps:$4 sm:$0xff]   ;;  %v2615_v8 = vld [vmem:[#allocation2 + $0x574] ss:$8 sps:$4 sm:$0xff]  }
  0x51   :  { %1612 = vmatprep.subr.bf16.mxu1 %v2519_v9  ;;  %1599 = vmatprep.mubr.bf16.mxu0 %v2606_v33  ;;  %v2607_v9 = vld [vmem:[#allocation2 + $0x470] ss:$8 sps:$4 sm:$0xff]   ;;  %v2648_v33 = vld [vmem:[#allocation2 + $0x414] ss:$8 sps:$4 sm:$0xff]  }
  0x52   :  { %1642 = vmatprep.mubr.bf16.mxu1 %v2612_v36  ;;  %v2646_v36 = vld [vmem:[#allocation2 + $0x410] ss:$8 sps:$4 sm:$0xff]  }
  0x53   :  { %1570 = vmatpush1.bf16.msra.mxu0 %v2514_v10  ;;  %v2610_v10 = vld [vmem:[%s2995_s0 + $0x18] ss:$56 sps:$4 sm:$0xff]  }
  0x54   :  { %1571 = vmatprep.subr.bf16.mxu0 %v2522_v11  ;;  %1613 = vmatpush1.bf16.msra.mxu1 %v2517_v12  ;;  %v2618_v11 = vld [vmem:[#allocation2 + $0x464] ss:$8 sps:$4 sm:$0xff]   ;;  %v2613_v12 = vld [vmem:[#allocation2 + $0x570] ss:$8 sps:$4 sm:$0xff]  }
  0x55   :  { %1614 = vmatprep.subr.bf16.mxu1 %v2525_v13  ;;  %v2621_v13 = vld [vmem:[#allocation2 + $0x564] ss:$8 sps:$4 sm:$0xff]  }
  0x57   :  { %1572 = vmatpush1.bf16.msra.mxu0 %v2520_v14  ;;  %v2616_v14 = vld [vmem:[#allocation2 + $0x460] ss:$8 sps:$4 sm:$0xff]  }
  0x58   :  { %1573 = vmatprep.subr.bf16.mxu0 %v2528_v15  ;;  %1615 = vmatpush1.bf16.msra.mxu1 %v2523_v16  ;;  %v2624_v15 = vld [vmem:[#allocation2 + $0x454] ss:$8 sps:$4 sm:$0xff]   ;;  %v2619_v16 = vld [vmem:[#allocation2 + $0x560] ss:$8 sps:$4 sm:$0xff]  }
  0x59   :  { %1616 = vmatprep.subr.bf16.mxu1 %v2531_v17  ;;  %v2627_v17 = vld [vmem:[#allocation2 + $0x554] ss:$8 sps:$4 sm:$0xff]  }
  0x5b   :  { %1574 = vmatpush1.bf16.msra.mxu0 %v2526_v18  ;;  %v2708_v18 = vld [vmem:[%s2995_s0 + $0x24] ss:$56 sps:$4 sm:$0xff]  }
  0x5c   :  { %1575 = vmatprep.subr.bf16.mxu0 %v2534_v19  ;;  %1617 = vmatpush1.bf16.msra.mxu1 %v2529_v20  ;;  %v2622_v19 = vld [vmem:[#allocation2 + $0x450] ss:$8 sps:$4 sm:$0xff]  }
  0x5d   :  { %1618 = vmatprep.subr.bf16.mxu1 %v2537_v21  ;;  %v2625_v20 = vld [vmem:[#allocation2 + $0x550] ss:$8 sps:$4 sm:$0xff]   ;;  %v2630_v21 = vld [vmem:[#allocation2 + $0x444] ss:$8 sps:$4 sm:$0xff]  }
  0x5f   :  { %1576 = vmatpush1.bf16.msra.mxu0 %v2532_v22  ;;  %v2714_v22 = vld [vmem:[%s2995_s0 + $0x2c] ss:$56 sps:$4 sm:$0xff]  }
  0x60   :  { %1577 = vmatprep.subr.bf16.mxu0 %v2540_v23  ;;  %1619 = vmatpush1.bf16.msra.mxu1 %v2535_v24  ;;  %v2633_v23 = vld [vmem:[#allocation2 + $0x544] ss:$8 sps:$4 sm:$0xff]   ;;  %v2628_v24 = vld [vmem:[#allocation2 + $0x440] ss:$8 sps:$4 sm:$0xff]  }
  0x61   :  { %1620 = vmatprep.subr.bf16.mxu1 %v2543_v25  ;;  %v2636_v25 = vld [vmem:[#allocation2 + $0x434] ss:$8 sps:$4 sm:$0xff]  }
  0x63   :  { %1578 = vmatpush1.bf16.msra.mxu0 %v2538_v26  ;;  %v2631_v26 = vld [vmem:[#allocation2 + $0x540] ss:$8 sps:$4 sm:$0xff]  }
  0x64   :  { %1579 = vmatprep.subr.bf16.mxu0 %v2546_v27  ;;  %1621 = vmatpush1.bf16.msra.mxu1 %v2541_v28  ;;  %v2639_v27 = vld [vmem:[#allocation2 + $0x534] ss:$8 sps:$4 sm:$0xff]   ;;  %v2634_v28 = vld [vmem:[#allocation2 + $0x430] ss:$8 sps:$4 sm:$0xff]  }
  0x65   :  { %1622 = vmatprep.subr.bf16.mxu1 %v2549_v29  ;;  %v2642_v29 = vld [vmem:[#allocation2 + $0x424] ss:$8 sps:$4 sm:$0xff]  }
  0x67   :  { %1580 = vmatpush1.bf16.msra.mxu0 %v2544_v30  ;;  %v2637_v30 = vld [vmem:[#allocation2 + $0x530] ss:$8 sps:$4 sm:$0xff]  }
  0x68   :  { %1581 = vmatprep.subr.bf16.mxu0 %v2552_v32  ;;  %1623 = vmatpush1.bf16.msra.mxu1 %v2547_v31  ;;  %v2645_v31 = vld [vmem:[#allocation2 + $0x524] ss:$8 sps:$4 sm:$0xff]   ;;  %v2640_v32 = vld [vmem:[#allocation2 + $0x420] ss:$8 sps:$4 sm:$0xff]  }
  0x69   :  { %1624 = vmatprep.subr.bf16.mxu1 %v2555_v34  ;;  %v2643_v34 = vld [vmem:[#allocation2 + $0x520] ss:$8 sps:$4 sm:$0xff]  }
  0x6b   :  { %1582 = vmatpush1.bf16.msra.mxu0 %v2550_v35  ;;  %v2651_v35 = vld [vmem:[#allocation2 + $0x514] ss:$8 sps:$4 sm:$0xff]  }
  0x6c   :  { %1583 = vmatprep.subr.bf16.mxu0 %v2558_v37  ;;  %1625 = vmatpush1.bf16.msra.mxu1 %v2553_v38  ;;  %v2654_v37 = vld [vmem:[#allocation2 + $0x404] ss:$8 sps:$4 sm:$0xff]   ;;  %v2649_v38 = vld [vmem:[#allocation2 + $0x510] ss:$8 sps:$4 sm:$0xff]  }
  0x6d   :  { %1626 = vmatprep.subr.bf16.mxu1 %v2561_v39  ;;  %v2657_v39 = vld [vmem:[#allocation2 + $0x504] ss:$8 sps:$4 sm:$0xff]  }
  0x6f   :  { %1584 = vmatpush2.bf16.msra.mxu0 %v2556_v40  ;;  %v2652_v40 = vld [vmem:[#allocation2 + $0x400] ss:$8 sps:$4 sm:$0xff]  }
  0x70   :  { %1585 = vmatprep.subr.bf16.mxu0 %v2564_v41  ;;  %1627 = vmatpush2.bf16.msra.mxu1 %v2559_v42  ;;  %v2660_v41 = vld [vmem:[#allocation2 + $0x4f4] ss:$8 sps:$4 sm:$0xff]   ;;  %v2655_v42 = vld [vmem:[#allocation2 + $0x500] ss:$8 sps:$4 sm:$0xff]  }
  0x71   :  { %1628 = vmatprep.subr.bf16.mxu1 %v2567_v43  ;;  %v2658_v43 = vld [vmem:[#allocation2 + $0x4f0] ss:$8 sps:$4 sm:$0xff]  }
  0x73   :  { %1586 = vmatpush2.bf16.msra.mxu0 %v2562_v44  ;;  %v2663_v44 = vld [vmem:[#allocation2 + $0x5f4] ss:$8 sps:$4 sm:$0xff]  }
  0x74   :  { %1587 = vmatprep.subr.bf16.mxu0 %v2570_v45  ;;  %1629 = vmatpush2.bf16.msra.mxu1 %v2565_v46  ;;  %v2666_v45 = vld [vmem:[#allocation2 + $0x4e4] ss:$8 sps:$4 sm:$0xff]   ;;  %v2661_v46 = vld [vmem:[#allocation2 + $0x5f0] ss:$8 sps:$4 sm:$0xff]  }
  0x75   :  { %1630 = vmatprep.subr.bf16.mxu1 %v2573_v47  ;;  %v2669_v47 = vld [vmem:[#allocation2 + $0x5e4] ss:$8 sps:$4 sm:$0xff]  }
  0x77   :  { %1588 = vmatpush2.bf16.msra.mxu0 %v2568_v48  ;;  %v2664_v48 = vld [vmem:[#allocation2 + $0x4e0] ss:$8 sps:$4 sm:$0xff]  }
  0x78   :  { %1589 = vmatprep.subr.bf16.mxu0 %v2576_v49  ;;  %1631 = vmatpush2.bf16.msra.mxu1 %v2571_v50  ;;  %v2672_v49 = vld [vmem:[#allocation2 + $0x4d4] ss:$8 sps:$4 sm:$0xff]   ;;  %v2667_v50 = vld [vmem:[#allocation2 + $0x5e0] ss:$8 sps:$4 sm:$0xff]  }
  0x79   :  { %1632 = vmatprep.subr.bf16.mxu1 %v2579_v51  ;;  %v2675_v51 = vld [vmem:[#allocation2 + $0x5d4] ss:$8 sps:$4 sm:$0xff]  }
  0x7b   :  { %1590 = vmatpush2.bf16.msra.mxu0 %v2574_v52  ;;  %v2670_v52 = vld [vmem:[#allocation2 + $0x4d0] ss:$8 sps:$4 sm:$0xff]  }
  0x7c   :  { %1591 = vmatprep.subr.bf16.mxu0 %v2582_v53  ;;  %1633 = vmatpush2.bf16.msra.mxu1 %v2577_v54  ;;  %v2678_v53 = vld [vmem:[#allocation2 + $0x4c4] ss:$8 sps:$4 sm:$0xff]   ;;  %v2673_v54 = vld [vmem:[#allocation2 + $0x5d0] ss:$8 sps:$4 sm:$0xff]  }
  0x7d   :  { %1634 = vmatprep.subr.bf16.mxu1 %v2585_v55  ;;  %v2681_v55 = vld [vmem:[#allocation2 + $0x5c4] ss:$8 sps:$4 sm:$0xff]  }
  0x7f   :  { %1592 = vmatpush2.bf16.msra.mxu0 %v2580_v56  ;;  %v2676_v56 = vld [vmem:[#allocation2 + $0x4c0] ss:$8 sps:$4 sm:$0xff]  }
  0x80   :  { %1593 = vmatprep.subr.bf16.mxu0 %v2588_v57  ;;  %1635 = vmatpush2.bf16.msra.mxu1 %v2583_v58  ;;  %v2684_v57 = vld [vmem:[#allocation2 + $0x4b4] ss:$8 sps:$4 sm:$0xff]   ;;  %v2679_v58 = vld [vmem:[#allocation2 + $0x5c0] ss:$8 sps:$4 sm:$0xff]  }
  0x81   :  { %1636 = vmatprep.subr.bf16.mxu1 %v2591_v59  ;;  %v2687_v59 = vld [vmem:[#allocation2 + $0x5b4] ss:$8 sps:$4 sm:$0xff]  }
  0x83   :  { %1594 = vmatpush2.bf16.msra.mxu0 %v2586_v60  ;;  %v2682_v60 = vld [vmem:[#allocation2 + $0x4b0] ss:$8 sps:$4 sm:$0xff]  }
  0x84   :  { %1595 = vmatprep.subr.bf16.mxu0 %v2594_v61  ;;  %1637 = vmatpush2.bf16.msra.mxu1 %v2589_v62  ;;  %v2690_v61 = vld [vmem:[#allocation2 + $0x4a4] ss:$8 sps:$4 sm:$0xff]   ;;  %v2685_v62 = vld [vmem:[#allocation2 + $0x5b0] ss:$8 sps:$4 sm:$0xff]  }
  0x85   :  { %1638 = vmatprep.subr.bf16.mxu1 %v2597_v63  ;;  %v2693_v63 = vld [vmem:[#allocation2 + $0x5a4] ss:$8 sps:$4 sm:$0xff]  }
  0x87   :  { %1596 = vmatpush2.bf16.msra.mxu0 %v2592_v0  ;;  %v2688_v0 = vld [vmem:[#allocation2 + $0x4a0] ss:$8 sps:$4 sm:$0xff]  }
  0x88   :  { %1597 = vmatprep.subr.bf16.mxu0 %v2600_v1  ;;  %1639 = vmatpush2.bf16.msra.mxu1 %v2595_v2  ;;  %v2696_v1 = vld [vmem:[#allocation2 + $0x494] ss:$8 sps:$4 sm:$0xff]   ;;  %v2691_v2 = vld [vmem:[#allocation2 + $0x5a0] ss:$8 sps:$4 sm:$0xff]  }
  0x89   :  { %1640 = vmatprep.subr.bf16.mxu1 %v2603_v3  ;;  %v2699_v3 = vld [vmem:[#allocation2 + $0x594] ss:$8 sps:$4 sm:$0xff]  }
  0x8b   :  { %1598 = vmatpush2.bf16.msra.mxu0 %v2598_v4  ;;  %v2694_v4 = vld [vmem:[#allocation2 + $0x490] ss:$8 sps:$4 sm:$0xff]  }
  0x8c   :  { %1653 = vmatprep.subr.bf16.mxu0 %v2609_v5  ;;  %1641 = vmatpush2.bf16.msra.mxu1 %v2601_v6  ;;  %v2702_v5 = vld [vmem:[#allocation2 + $0x484] ss:$8 sps:$4 sm:$0xff]   ;;  %v2697_v6 = vld [vmem:[#allocation2 + $0x590] ss:$8 sps:$4 sm:$0xff]  }
  0x8d   :  { %1696 = vmatprep.subr.bf16.mxu1 %v2615_v8  ;;  %v2700_v8 = vld [vmem:[#allocation2 + $0x480] ss:$8 sps:$4 sm:$0xff]  }
  0x8e   :  { %1600 = vmatmul.mubr.bf16.vlgmr.msra.gmra.mxu0 %v2604_v7  ;;  %v2705_v7 = vld [vmem:[#allocation2 + $0x584] ss:$8 sps:$4 sm:$0xff]  }
  0x8f   :  { %1654 = vmatpush1.bf16.msra.mxu0 %v2607_v9  ;;  %1643 = vmatmul.mubr.bf16.vlgmr.msra.gmra.mxu1 %v2610_v10  ;;  %v2711_v9 = vld [vmem:[#allocation2 + $0x674] ss:$8 sps:$4 sm:$0xff]   ;;  %v2703_v10 = vld [vmem:[#allocation2 + $0x580] ss:$8 sps:$4 sm:$0xff]  }
  0x90   :  { %1655 = vmatprep.subr.bf16.mxu0 %v2618_v11  ;;  %1697 = vmatpush1.bf16.msra.mxu1 %v2613_v12  ;;  %v2706_v11 = vld [vmem:[%s2995_s0 + $0x20] ss:$56 sps:$4 sm:$0xff]  }
  0x91   :  { %1698 = vmatprep.subr.bf16.mxu1 %v2621_v13  ;;  %1685 = vmatprep.mubr.bf16.mxu0 %v2708_v18  ;;  %v2709_v12 = vld [vmem:[#allocation2 + $0x670] ss:$8 sps:$4 sm:$0xff]   ;;  %v2762_v13 = vld [vmem:[%s2995_s0 + $0x34] ss:$56 sps:$4 sm:$0xff]  }
  0x92   :  { %1728 = vmatprep.mubr.bf16.mxu1 %v2714_v22  ;;  %v2718_v18 = vld [vmem:[#allocation2 + $0x650] ss:$8 sps:$4 sm:$0xff]  }
  0x93   :  { %1656 = vmatpush1.bf16.msra.mxu0 %v2616_v14  ;;  %v2712_v14 = vld [vmem:[%s2995_s0 + $0x28] ss:$56 sps:$4 sm:$0xff]   ;;  %v2724_v22 = vld [vmem:[#allocation2 + $0x630] ss:$8 sps:$4 sm:$0xff]  }
  0x94   :  { %1657 = vmatprep.subr.bf16.mxu0 %v2624_v15  ;;  %1699 = vmatpush1.bf16.msra.mxu1 %v2619_v16  ;;  %v2717_v15 = vld [vmem:[#allocation2 + $0x664] ss:$8 sps:$4 sm:$0xff]   ;;  %v2715_v16 = vld [vmem:[#allocation2 + $0x660] ss:$8 sps:$4 sm:$0xff]  }
  0x95   :  { %1700 = vmatprep.subr.bf16.mxu1 %v2627_v17  ;;  %v2720_v17 = vld [vmem:[#allocation2 + $0x654] ss:$8 sps:$4 sm:$0xff]  }
  0x97   :  { %1658 = vmatpush1.bf16.msra.mxu0 %v2622_v19  ;;  %v2723_v19 = vld [vmem:[#allocation2 + $0x644] ss:$8 sps:$4 sm:$0xff]  }
  0x98   :  { %1659 = vmatprep.subr.bf16.mxu0 %v2630_v21  ;;  %1701 = vmatpush1.bf16.msra.mxu1 %v2625_v20  ;;  %v2721_v20 = vld [vmem:[#allocation2 + $0x640] ss:$8 sps:$4 sm:$0xff]   ;;  %v2726_v21 = vld [vmem:[#allocation2 + $0x634] ss:$8 sps:$4 sm:$0xff]  }
  0x99   :  { %1702 = vmatprep.subr.bf16.mxu1 %v2633_v23  ;;  %v2729_v23 = vld [vmem:[#allocation2 + $0x624] ss:$8 sps:$4 sm:$0xff]  }
  0x9b   :  { %1660 = vmatpush1.bf16.msra.mxu0 %v2628_v24  ;;  %v2727_v24 = vld [vmem:[#allocation2 + $0x620] ss:$8 sps:$4 sm:$0xff]  }
  0x9c   :  { %1661 = vmatprep.subr.bf16.mxu0 %v2636_v25  ;;  %1703 = vmatpush1.bf16.msra.mxu1 %v2631_v26  ;;  %v2732_v25 = vld [vmem:[#allocation2 + $0x614] ss:$8 sps:$4 sm:$0xff]   ;;  %v2730_v26 = vld [vmem:[#allocation2 + $0x610] ss:$8 sps:$4 sm:$0xff]  }
  0x9d   :  { %1704 = vmatprep.subr.bf16.mxu1 %v2639_v27  ;;  %v2735_v27 = vld [vmem:[#allocation2 + $0x604] ss:$8 sps:$4 sm:$0xff]  }
  0x9f   :  { %1662 = vmatpush1.bf16.msra.mxu0 %v2634_v28  ;;  %v2733_v28 = vld [vmem:[#allocation2 + $0x600] ss:$8 sps:$4 sm:$0xff]  }
  0xa0   :  { %1663 = vmatprep.subr.bf16.mxu0 %v2642_v29  ;;  %1705 = vmatpush1.bf16.msra.mxu1 %v2637_v30  ;;  %v2738_v29 = vld [vmem:[#allocation2 + $0x6f4] ss:$8 sps:$4 sm:$0xff]   ;;  %v2736_v30 = vld [vmem:[#allocation2 + $0x6f0] ss:$8 sps:$4 sm:$0xff]  }
  0xa1   :  { %1706 = vmatprep.subr.bf16.mxu1 %v2645_v31  ;;  %v2741_v31 = vld [vmem:[#allocation2 + $0x6e4] ss:$8 sps:$4 sm:$0xff]  }
  0xa3   :  { %1664 = vmatpush1.bf16.msra.mxu0 %v2640_v32  ;;  %v2739_v32 = vld [vmem:[#allocation2 + $0x6e0] ss:$8 sps:$4 sm:$0xff]  }
  0xa4   :  { %1665 = vmatprep.subr.bf16.mxu0 %v2648_v33  ;;  %1707 = vmatpush1.bf16.msra.mxu1 %v2643_v34  ;;  %v2744_v33 = vld [vmem:[#allocation2 + $0x6d4] ss:$8 sps:$4 sm:$0xff]   ;;  %v2742_v34 = vld [vmem:[#allocation2 + $0x6d0] ss:$8 sps:$4 sm:$0xff]  }
  0xa5   :  { %1708 = vmatprep.subr.bf16.mxu1 %v2651_v35  ;;  %v2747_v35 = vld [vmem:[#allocation2 + $0x6c4] ss:$8 sps:$4 sm:$0xff]  }
  0xa7   :  { %1666 = vmatpush1.bf16.msra.mxu0 %v2646_v36  ;;  %v2745_v36 = vld [vmem:[#allocation2 + $0x6c0] ss:$8 sps:$4 sm:$0xff]  }
  0xa8   :  { %1667 = vmatprep.subr.bf16.mxu0 %v2654_v37  ;;  %1709 = vmatpush1.bf16.msra.mxu1 %v2649_v38  ;;  %v2750_v37 = vld [vmem:[#allocation2 + $0x6b4] ss:$8 sps:$4 sm:$0xff]   ;;  %v2748_v38 = vld [vmem:[#allocation2 + $0x6b0] ss:$8 sps:$4 sm:$0xff]  }
  0xa9   :  { %1710 = vmatprep.subr.bf16.mxu1 %v2657_v39  ;;  %v2753_v39 = vld [vmem:[#allocation2 + $0x6a4] ss:$8 sps:$4 sm:$0xff]  }
  0xab   :  { %1668 = vmatpush1.bf16.msra.mxu0 %v2652_v40  ;;  %v2751_v40 = vld [vmem:[#allocation2 + $0x6a0] ss:$8 sps:$4 sm:$0xff]  }
  0xac   :  { %1669 = vmatprep.subr.bf16.mxu0 %v2660_v41  ;;  %1711 = vmatpush1.bf16.msra.mxu1 %v2655_v42  ;;  %v2756_v41 = vld [vmem:[#allocation2 + $0x694] ss:$8 sps:$4 sm:$0xff]   ;;  %v2754_v42 = vld [vmem:[#allocation2 + $0x690] ss:$8 sps:$4 sm:$0xff]  }
  0xad   :  { %1712 = vmatprep.subr.bf16.mxu1 %v2663_v44  ;;  %v2757_v44 = vld [vmem:[#allocation2 + $0x680] ss:$8 sps:$4 sm:$0xff]  }
  0xaf   :  { %1670 = vmatpush2.bf16.msra.mxu0 %v2658_v43  ;;  %v2759_v43 = vld [vmem:[#allocation2 + $0x684] ss:$8 sps:$4 sm:$0xff]  }
  0xb0   :  { %1671 = vmatprep.subr.bf16.mxu0 %v2666_v45  ;;  %1713 = vmatpush2.bf16.msra.mxu1 %v2661_v46  ;;  %v2760_v45 = vld [vmem:[%s2995_s0 + $0x30] ss:$56 sps:$4 sm:$0xff]   ;;  %v2763_v46 = vld [vmem:[%s2998_s3 + $0x78] sm:$0xff]  }
  0xb1   :  { %1714 = vmatprep.subr.bf16.mxu1 %v2669_v47  ;;  %v2764_v47 = vld [vmem:[%s2998_s3 + $0x38] sm:$0xff]  }
  0xb3   :  { %1672 = vmatpush2.bf16.msra.mxu0 %v2664_v48  ;;  %v2765_v48 = vld [vmem:[%s2998_s3 + $0x70] sm:$0xff]  }
  0xb4   :  { %1673 = vmatprep.subr.bf16.mxu0 %v2672_v49  ;;  %1715 = vmatpush2.bf16.msra.mxu1 %v2667_v50  ;;  %v2766_v49 = vld [vmem:[%s2998_s3 + $0x30] sm:$0xff]   ;;  %v2767_v50 = vld [vmem:[%s2998_s3 + $0x68] sm:$0xff]  }
  0xb5   :  { %1716 = vmatprep.subr.bf16.mxu1 %v2675_v51  ;;  %v2768_v51 = vld [vmem:[%s2998_s3 + $0x28] sm:$0xff]  }
  0xb7   :  { %1674 = vmatpush2.bf16.msra.mxu0 %v2670_v52  ;;  %v2769_v52 = vld [vmem:[%s2998_s3 + $0x60] sm:$0xff]  }
  0xb8   :  { %1675 = vmatprep.subr.bf16.mxu0 %v2678_v53  ;;  %1717 = vmatpush2.bf16.msra.mxu1 %v2673_v54  ;;  %v2770_v53 = vld [vmem:[%s2998_s3 + $0x20] sm:$0xff]   ;;  %v2771_v54 = vld [vmem:[%s2998_s3 + $0x58] sm:$0xff]  }
  0xb9   :  { %1718 = vmatprep.subr.bf16.mxu1 %v2681_v55  ;;  %v2772_v55 = vld [vmem:[%s2998_s3 + $0x18] sm:$0xff]  }
  0xbb   :  { %1676 = vmatpush2.bf16.msra.mxu0 %v2676_v56  ;;  %v2773_v56 = vld [vmem:[%s2998_s3 + $0x50] sm:$0xff]  }
  0xbc   :  { %1677 = vmatprep.subr.bf16.mxu0 %v2684_v57  ;;  %1719 = vmatpush2.bf16.msra.mxu1 %v2679_v58  ;;  %v2774_v57 = vld [vmem:[%s2998_s3 + $0x10] sm:$0xff]   ;;  %v2775_v58 = vld [vmem:[%s2998_s3 + $0x48] sm:$0xff]  }
  0xbd   :  { %1720 = vmatprep.subr.bf16.mxu1 %v2687_v59  ;;  %v2776_v59 = vld [vmem:[%s2998_s3 + $0x8] sm:$0xff]  }
  0xbf   :  { %1678 = vmatpush2.bf16.msra.mxu0 %v2682_v60  ;;  %v2777_v60 = vld [vmem:[%s2998_s3 + $0x40] sm:$0xff]  }
  0xc0   :  { %1679 = vmatprep.subr.bf16.mxu0 %v2690_v61  ;;  %1721 = vmatpush2.bf16.msra.mxu1 %v2685_v62  ;;  %v2778_v61 = vld [vmem:[%s2998_s3] sm:$0xff]   ;;  %v2812_v62 = vmov 0.0  }
  0xc1   :  { %1722 = vmatprep.subr.bf16.mxu1 %v2693_v63 }
  0xc3   :  { %1680 = vmatpush2.bf16.msra.mxu0 %v2688_v0 }
  0xc4   :  { %1681 = vmatprep.subr.bf16.mxu0 %v2696_v1  ;;  %1723 = vmatpush2.bf16.msra.mxu1 %v2691_v2 }
  0xc5   :  { %1724 = vmatprep.subr.bf16.mxu1 %v2699_v3 }
  0xc7   :  { %1682 = vmatpush2.bf16.msra.mxu0 %v2694_v4 }
  0xc8   :  { %1683 = vmatprep.subr.bf16.mxu0 %v2702_v5  ;;  %1725 = vmatpush2.bf16.msra.mxu1 %v2697_v6  ;;  %v281_v6 = vlaneseq }
  0xc9   :  { %1726 = vmatprep.subr.bf16.mxu1 %v2705_v7 }
  0xcb   :  { %1684 = vmatpush2.bf16.msra.mxu0 %v2700_v8 }
  0xcc   :  { %1739 = vmatprep.subr.bf16.mxu0 %v2711_v9  ;;  %1727 = vmatpush2.bf16.msra.mxu1 %v2703_v10  ;;  %v282_v9 = vshrl.u32 %v281_v6, 7  ;;  %v2780_v6 = vld [vmem:[%s3000_s5 + $0x30] sm:$0xff]  }
  0xcd   :  { %2350 = vmatprep.subr.bf16.mxu1 %v2763_v46 }
  0xce   :  { %1686 = vmatmul.mubr.bf16.vlgmr.msra.gmra.mxu0 %v2706_v11 }
  0xcf   :  { %1740 = vmatpush1.bf16.msra.mxu0 %v2709_v12  ;;  %1771 = vmatprep.mubr.bf16.mxu0 %v2762_v13  ;;  %v287_v12 = vsub.s32 1, %v282_v9  ;;  %v279_v13 = vld [vmem:[%s2997_s2] sm:$0x3] }
  0xd0   :  { %1729 = vmatmul.mubr.bf16.vlgmr.msra.gmra.mxu1 %v2712_v14  ;;  %1741 = vmatprep.subr.bf16.mxu0 %v2717_v15  ;;  %v283_v14 = vsub.s32 0, %v282_v9  ;;  %v2783_v9 = vld [vmem:[%s3000_s5 + $0x18] sm:$0xff]  }
  0xd1   :  { %2351 = vmatpush3.bf16.msra.mxu1 %v2764_v47 }
  0xd2   :  { %2352 = vmatprep.subr.bf16.mxu1 %v2765_v48 }
  0xd3   :  { %1742 = vmatpush1.bf16.msra.mxu0 %v2715_v16 }
  0xd4   :  { %1743 = vmatprep.subr.bf16.mxu0 %v2720_v17  ;;  %v288_v17 = vrot.slane %v279_v13, %v287_v12  ;;  %v2786_v12 = vld [vmem:[%s3000_s5] sm:$0xff]  }
  0xd5   :  { %2353 = vmatpush3.bf16.msra.mxu1 %v2766_v49 }
  0xd6   :  { %2354 = vmatprep.subr.bf16.mxu1 %v2767_v50 }
  0xd7   :  { %1744 = vmatpush1.bf16.msra.mxu0 %v2718_v18  ;;  %v284_v18 = vrot.slane %v279_v13, %v283_v14 }
  0xd8   :  { %1745 = vmatprep.subr.bf16.mxu0 %v2723_v19 }
  0xd9   :  { %2355 = vmatpush3.bf16.msra.mxu1 %v2768_v51 }
  0xda   :  { %2356 = vmatprep.subr.bf16.mxu1 %v2769_v52 }
  0xdb   :  { %1746 = vmatpush1.bf16.msra.mxu0 %v2721_v20 }
  0xdc   :  { %1747 = vmatprep.subr.bf16.mxu0 %v2726_v21 }
  0xdd   :  { %2357 = vmatpush3.bf16.msra.mxu1 %v2770_v53 }
  0xde   :  { %2358 = vmatprep.subr.bf16.mxu1 %v2771_v54 }
  0xdf   :  { %1748 = vmatpush1.bf16.msra.mxu0 %v2724_v22 }
  0xe0   :  { %1749 = vmatprep.subr.bf16.mxu0 %v2729_v23 }
  0xe1   :  { %2359 = vmatpush3.bf16.msra.mxu1 %v2772_v55 }
  0xe2   :  { %2360 = vmatprep.subr.bf16.mxu1 %v2773_v56 }
  0xe3   :  { %1750 = vmatpush1.bf16.msra.mxu0 %v2727_v24 }
  0xe4   :  { %1751 = vmatprep.subr.bf16.mxu0 %v2732_v25 }
  0xe5   :  { %2361 = vmatpush3.bf16.msra.mxu1 %v2774_v57 }
  0xe6   :  { %2362 = vmatprep.subr.bf16.mxu1 %v2775_v58 }
  0xe7   :  { %1752 = vmatpush1.bf16.msra.mxu0 %v2730_v26 }
  0xe8   :  { %1753 = vmatprep.subr.bf16.mxu0 %v2735_v27 }
  0xe9   :  { %2363 = vmatpush3.bf16.msra.mxu1 %v2776_v59 }
  0xea   :  { %2364 = vmatprep.subr.bf16.mxu1 %v2777_v60 }
  0xeb   :  { %1754 = vmatpush1.bf16.msra.mxu0 %v2733_v28 }
  0xec   :  { %1755 = vmatprep.subr.bf16.mxu0 %v2738_v29 }
  0xed   :  { %2365 = vmatpush3.bf16.msra.mxu1 %v2778_v61 }
  0xee   :  { %2381 = vmatprep.subr.bf16.mxu1 %v2812_v62 }
  0xef   :  { %1756 = vmatpush2.bf16.msra.mxu0 %v2736_v30 }
  0xf0   :  { %1757 = vmatprep.subr.bf16.mxu0 %v2741_v31 }
  0xf3   :  { %1758 = vmatpush2.bf16.msra.mxu0 %v2739_v32 }
  0xf4   :  { %1759 = vmatprep.subr.bf16.mxu0 %v2744_v33 }
  0xf7   :  { %1760 = vmatpush2.bf16.msra.mxu0 %v2742_v34 }
  0xf8   :  { %1761 = vmatprep.subr.bf16.mxu0 %v2747_v35 }
  0xfb   :  { %1762 = vmatpush2.bf16.msra.mxu0 %v2745_v36 }
  0xfc   :  { %1763 = vmatprep.subr.bf16.mxu0 %v2750_v37 }
  0xff   :  { %1764 = vmatpush2.bf16.msra.mxu0 %v2748_v38 }
 0x100   :  { %1765 = vmatprep.subr.bf16.mxu0 %v2753_v39 }
 0x103   :  { %1766 = vmatpush2.bf16.msra.mxu0 %v2751_v40 }
 0x104   :  { %1767 = vmatprep.subr.bf16.mxu0 %v2756_v41 }
 0x107   :  { %1768 = vmatpush2.bf16.msra.mxu0 %v2754_v42 }
 0x108   :  { %1769 = vmatprep.subr.bf16.mxu0 %v2759_v43 }
 0x10b   :  { %1770 = vmatpush2.bf16.msra.mxu0 %v2757_v44 }
 0x10e   :  { %1772 = vmatmul.mubr.bf16.vlgmr.msra.gmra.mxu0 %v2760_v45  ;;  %v1515_v63 = vpop.f32.mrf.mxu0 }
 0x10f   :  { %v1558_v1 = vpop.f32.mrf.mxu1  ;;  %v1516_v24 = vadd.f32 %v1515_v63, %v284_v18 }
 0x110   :  { %v1517_v0 = vpop.f32.mrf.mxu0 }
 0x111   :  { %v1560_v3 = vpop.f32.mrf.mxu1  ;;  %v1518_v22 = vadd.f32 %v1517_v0, %v288_v17  ;;  %v1559_v31 = vadd.f32 %v1558_v1, %v1516_v24 }
 0x112   :  { %v1519_v2 = vpop.f32.mrf.mxu0 }
 0x113   :  { %v1562_v5 = vpop.f32.mrf.mxu1  ;;  %v1520_v23 = vadd.f32 %v1519_v2, %v284_v18  ;;  %v1561_v29 = vadd.f32 %v1560_v3, %v1518_v22 }
 0x114   :  { %v1521_v4 = vpop.f32.mrf.mxu0 }
 0x115   :  { %v1564_v8 = vpop.f32.mrf.mxu1  ;;  %v1522_v26 = vadd.f32 %v1521_v4, %v288_v17  ;;  %v1563_v30 = vadd.f32 %v1562_v5, %v1520_v23  ;;  %v2779_v4 = vld [vmem:[%s3000_s5 + $0x38] sm:$0xff]  }
 0x117   :  { %v1565_v32 = vadd.f32 %v1564_v8, %v1522_v26  ;;  %v2782_v8 = vld [vmem:[%s3000_s5 + $0x20] sm:$0xff]  }
 0x14e   :  { %v1601_v7 = vpop.f32.mrf.mxu0 }
 0x14f   :  { %v1644_v11 = vpop.f32.mrf.mxu1  ;;  %v1602_v35 = vadd.f32 %v1601_v7, %v1559_v31  ;;  %v2781_v7 = vld [vmem:[%s3000_s5 + $0x28] sm:$0xff]  }
 0x150   :  { %v1603_v10 = vpop.f32.mrf.mxu0 }
 0x151   :  { %v1646_v16 = vpop.f32.mrf.mxu1  ;;  %v1604_v33 = vadd.f32 %v1603_v10, %v1561_v29  ;;  %v1645_v41 = vadd.f32 %v1644_v11, %v1602_v35  ;;  %v2784_v10 = vld [vmem:[%s3000_s5 + $0x10] sm:$0xff]   ;;  %v2785_v11 = vld [vmem:[%s3000_s5 + $0x8] sm:$0xff]  }
 0x152   :  { %v1605_v15 = vpop.f32.mrf.mxu0 }
 0x153   :  { %v1648_v20 = vpop.f32.mrf.mxu1  ;;  %v1606_v34 = vadd.f32 %v1605_v15, %v1563_v30  ;;  %v1647_v39 = vadd.f32 %v1646_v16, %v1604_v33  ;;  %v2324_v16 = vld [vmem:[%s2999_s4] ss:$0 sm:$0xff] }
 0x154   :  { %v1607_v19 = vpop.f32.mrf.mxu0 }
 0x155   :  { %v1650_v25 = vpop.f32.mrf.mxu1  ;;  %v1608_v38 = vadd.f32 %v1607_v19, %v1565_v32  ;;  %v1649_v40 = vadd.f32 %v1648_v20, %v1606_v34 }
 0x157   :  { %v1651_v44 = vadd.f32 %v1650_v25, %v1608_v38 }
 0x18e   :  { %v1687_v21 = vpop.f32.mrf.mxu0 }
 0x18f   :  { %v1688_v47 = vadd.f32 %v1687_v21, %v1645_v41 }
 0x190   :  { %v1689_v27 = vpop.f32.mrf.mxu0  ;;  %v1730_v28 = vpop.f32.mrf.mxu1 }
 0x191   :  { %v1690_v45 = vadd.f32 %v1689_v27, %v1647_v39  ;;  %v1731_v54 = vadd.f32 %v1730_v28, %v1688_v47 }
 0x192   :  { %v1691_v36 = vpop.f32.mrf.mxu0  ;;  %v1732_v37 = vpop.f32.mrf.mxu1 }
 0x193   :  { %v1692_v46 = vadd.f32 %v1691_v36, %v1649_v40  ;;  %v1733_v52 = vadd.f32 %v1732_v37, %v1690_v45 }
 0x194   :  { %v1693_v42 = vpop.f32.mrf.mxu0  ;;  %v1734_v43 = vpop.f32.mrf.mxu1 }
 0x195   :  { %v1694_v49 = vadd.f32 %v1693_v42, %v1651_v44  ;;  %v1735_v53 = vadd.f32 %v1734_v43, %v1692_v46 }
 0x196   :  { %v1736_v50 = vpop.f32.mrf.mxu1 }
 0x197   :  { %v1737_v56 = vadd.f32 %v1736_v50, %v1694_v49 }
 0x1ce   :  { %v1773_v48 = vpop.f32.mrf.mxu0 }
 0x1cf   :  { %v1774_v59 = vadd.f32 %v1773_v48, %v1731_v54 }
 0x1d0   :  { %v1775_v51 = vpop.f32.mrf.mxu0 }
 0x1d1   :  { %v1776_v57 = vadd.f32 %v1775_v51, %v1733_v52  ;;  %v1782_v2 = vmax.f32 %v1774_v59, 0.0 }
 0x1d2   :  { %v1777_v55 = vpop.f32.mrf.mxu0 }
 0x1d3   :  { %v1778_v58 = vadd.f32 %v1777_v55, %v1735_v53  ;;  %v1783_v0 = vmax.f32 %v1776_v57, 0.0 }
 0x1d4   :  { %v1779_v60 = vpop.f32.mrf.mxu0 }
 0x1d5   :  { %v1780_v61 = vadd.f32 %v1779_v60, %v1737_v56  ;;  %v1784_v63 = vmax.f32 %v1778_v58, 0.0 }
 0x1d7   :  { %v1785_v1 = vmax.f32 %v1780_v61, 0.0  ;;  %v1786_v5 = vpack.c.bf16 %v1784_v63, %v1782_v2 }
 0x1d9   :  { %v1787_v3 = vpack.c.bf16 %v1785_v1, %v1783_v0 }
 0x1db   :  { %1955 = vmatprep.mubr.bf16.mxu1 %v1787_v3 }
 0x1dc   :  { %1956 = vmatmul.mubr.bf16.vlgmr.msra.gmra.mxu1 %v1786_v5 }
 0x1dd   :  { %2382 = vmatpush3.bf16.msra.mxu1 %v2779_v4  ;;  %2397 = vmatprep.mubr.msk.bf16.mxu1 %vm2813_vm0, %v2812_v62 }
 0x1de   :  { %2383 = vmatprep.subr.bf16.mxu1 %v2812_v62 }
 0x1e1   :  { %2384 = vmatpush3.bf16.msra.mxu1 %v2780_v6 }
 0x1e2   :  { %2385 = vmatprep.subr.bf16.mxu1 %v2812_v62 }
 0x1e5   :  { %2386 = vmatpush3.bf16.msra.mxu1 %v2781_v7 }
 0x1e6   :  { %2387 = vmatprep.subr.bf16.mxu1 %v2812_v62 }
 0x1e9   :  { %2388 = vmatpush3.bf16.msra.mxu1 %v2782_v8 }
 0x1ea   :  { %2389 = vmatprep.subr.bf16.mxu1 %v2812_v62 }
 0x1ed   :  { %2390 = vmatpush3.bf16.msra.mxu1 %v2783_v9 }
 0x1ee   :  { %2391 = vmatprep.subr.bf16.mxu1 %v2812_v62 }
 0x1f1   :  { %2392 = vmatpush3.bf16.msra.mxu1 %v2784_v10 }
 0x1f2   :  { %2393 = vmatprep.subr.bf16.mxu1 %v2812_v62 }
 0x1f5   :  { %2394 = vmatpush3.bf16.msra.mxu1 %v2785_v11 }
 0x1f6   :  { %2395 = vmatprep.subr.bf16.mxu1 %v2812_v62  ;;  %v2341_v62 = vld [vmem:[%s3001_s6] ss:$0 sm:$0xff] }
 0x1f9   :  { %2396 = vmatpush3.bf16.msra.mxu1 %v2786_v12 }
 0x29c   :  { %v2366_v13 = vpop.f32.mrf.mxu1 }
 0x29e   :  { %v2367_v14 = vpop.f32.mrf.mxu1 }
 0x29f   :  { %v2368_v15 = vadd.f32 %v2367_v14, %v2366_v13 }
 0x2a0   :  { %v2369_v17 = vpop.f32.mrf.mxu1 }
 0x2a1   :  { %v1958_v19 = vadd.f32 %v2368_v15, %v2324_v16 }
 0x2a2   :  { %v2370_v18 = vpop.f32.mrf.mxu1 }
 0x2a3   :  { %v2371_v20 = vadd.f32 %v2370_v18, %v2369_v17  ;;  %v1964_v22 = vmax.f32 %v1958_v19, 0.0 }
 0x2a5   :  { %v1961_v21 = vadd.f32 %v2371_v20, %v2324_v16 }
 0x2a7   :  { %v1965_v23 = vmax.f32 %v1961_v21, 0.0 }
 0x2a9   :  { %v1966_v24 = vpack.c.bf16 %v1965_v23, %v1964_v22 }
 0x2ab   :  { %2398 = vmatmul.mubr.bf16.vlgmr.msra.gmra.mxu1 %v1966_v24 }
 0x36b   :  { %v2072_v25 = vpop.f32.mrf.mxu1 }
 0x36c   :  { %v2073_v26 = vadd.f32 %v2341_v62, %v2072_v25 }
 0x36d   :  { %v2399_v27 = vpop.f32.mrf.mxu1 }
 0x36e   :  { %2079 = vst [vmem:[%s3002_s7] sm:$0xff] %v2073_v26 }
 0x36f   :  { %v2075_v28 = vpop.f32.mrf.mxu1 }
 0x370   :  { %v2076_v29 = vadd.f32 %v2341_v62, %v2075_v28 }
 0x371   :  { %v2400_v30 = vpop.f32.mrf.mxu1 }
 0x372   :  { %2080 = vst [vmem:[%s3002_s7 + $0x8] sm:$0xff] %v2076_v29 }
 0x373   :  { %2085 = vsyncpa [#allocation3], 1 }

</bundles_post_ra>
